<compile_context>
chip_gen: v7x
topology: tpu7x:2x2x1
jax: 0.10.0
libtpu: 0.0.40
codegen_flags: <defaults>
</compile_context>

<pallas_src>
import functools
import math

import jax
import jax.numpy as jnp
from jax.experimental import pallas as pl
from jax.experimental.pallas import tpu as pltpu


LN_EPS = 1e-5        # torch.nn.LayerNorm default
_LANE = 128          # lane width
_SUBLANE = 16        # safe sublane multiple for both f32 (8) and bf16 (16)


def _round_up(n, m):
    return ((n + m - 1) // m) * m


def _pad_to(a, shape):
    """Zero-pad `a` up to `shape`; no-op (no copy emitted) if already there."""
    shape = tuple(shape)
    if tuple(a.shape) == shape:
        return a
    return jnp.pad(a, [(0, t - s) for s, t in zip(a.shape, shape)])


def _pick_tile(total, target, quantum):
    """Largest multiple of `quantum` <= target that evenly divides `total`."""
    best = quantum
    t = quantum
    cap = min(target, total)
    while t <= cap:
        if total % t == 0:
            best = t
        t += quantum
    return best


def _vmem_capacity_bytes():
    """Physical VMEM per TensorCore; conservative fallback if query fails."""
    try:
        info = pltpu.get_tpu_info()
        cap = int(getattr(info, "vmem_capacity_bytes", 0) or 0)
        if cap > 0:
            return cap
    except Exception:
        pass
    return 64 * 1024 * 1024   # v7x-class per-TC VMEM (safe lower bound)


# ----------------------------------------------------------------------------
# Kernel
# ----------------------------------------------------------------------------
def _ff_kernel(norm, h_real, *refs):
    """grid = (batch_tiles, k_tiles); axis 1 (k) is the D_in contraction."""
    if norm:
        (x_ref, w1_ref, b1_ref, g_ref, be_ref, w2_ref, b2_ref,
         o_ref, acc_ref) = refs
    else:
        x_ref, w1_ref, b1_ref, w2_ref, b2_ref, o_ref, acc_ref = refs

    k = pl.program_id(1)

    # linear1 partial product: native-dtype MXU inputs, f32 accumulation.
    partial_prod = jnp.dot(x_ref[...], w1_ref[...],
                           preferred_element_type=jnp.float32)

    @pl.when(k == 0)
    def _():                       # plain store: no zero-fill + RMW on step 0
        acc_ref[...] = partial_prod

    @pl.when(k != 0)
    def _():
        acc_ref[...] += partial_prod

    @pl.when(k == pl.num_programs(1) - 1)
    def _():
        h = acc_ref[...] + b1_ref[...]                     # (TB, Hp), f32

        if norm:
            # Two-pass LayerNorm statistics over the *real* hidden width.
            # Padded columns of h are exactly zero (zero-padded w1/b1), so the
            # mean sum is unaffected; the centered values are masked so padded
            # lanes do not pollute the variance.
            inv_h = 1.0 / h_real
            mean = jnp.sum(h, axis=-1, keepdims=True) * inv_h
            d = h - mean
            if h.shape[-1] > h_real:
                col = jax.lax.broadcasted_iota(jnp.int32, h.shape, 1)
                d = jnp.where(col < h_real, d, 0.0)
            var = jnp.sum(d * d, axis=-1, keepdims=True) * inv_h
            h = d * jax.lax.rsqrt(var + LN_EPS)
            h = h * g_ref[...] + be_ref[...]               # padded gamma/beta=0

        h = jnp.maximum(h, 0.0)                            # ReLU
        # Dropout(p=0) in eval mode is the identity.

        # Reuse the accumulator in place for the epilogue so the (TB, Hp) f32
        # intermediate does not live as extra compiler scratch.
        acc_ref[...] = h

        # linear2: cast the f32 intermediate down to the weight dtype so bf16
        # weights hit the fast MXU path; accumulate in f32.
        y = jnp.dot(acc_ref[...].astype(w2_ref.dtype), w2_ref[...],
                    preferred_element_type=jnp.float32)
        o_ref[...] = (y + b2_ref[...]).astype(o_ref.dtype)


# ----------------------------------------------------------------------------
# Host-side helpers
# ----------------------------------------------------------------------------
def pad_ff_params(w1_t, b1, w2_t, b2, gamma=None, beta=None, *, norm=False):
    """Pad parameters to lane-aligned shapes ONCE at init (outside jit) so the
    jitted hot path never re-pads the weights.

    Returns (padded_params_tuple, (d_in, hidden, d_out)) where the dims are the
    real logical sizes to pass back into feedforward()."""
    d_in, hidden = w1_t.shape
    d_out = w2_t.shape[1]
    di_p = _round_up(d_in, _LANE)
    h_p = _round_up(hidden, _LANE)
    do_p = _round_up(d_out, _LANE)
    params = [
        _pad_to(w1_t, (di_p, h_p)),
        _pad_to(b1.astype(jnp.float32), (h_p,)),
        _pad_to(w2_t, (h_p, do_p)),
        _pad_to(b2.astype(jnp.float32), (do_p,)),
    ]
    if norm:
        gamma = jnp.ones((hidden,), jnp.float32) if gamma is None else gamma
        beta = jnp.zeros((hidden,), jnp.float32) if beta is None else beta
        params += [_pad_to(gamma.astype(jnp.float32), (h_p,)),
                   _pad_to(beta.astype(jnp.float32), (h_p,))]
    return tuple(params), (d_in, hidden, d_out)


def feedforward(x, w1_t, b1, w2_t, b2, gamma=None, beta=None, *, norm=False,
                d_in=None, hidden=None, d_out=None, tile_b=None, tile_k=None):
    """Fused linear1 -> [LayerNorm] -> ReLU -> Dropout(0) -> linear2.

    x:    (B, D_in)
    w1_t: (D_in, H)   linear1 weight, pre-transposed to [in, out]
    b1:   (H,)
    w2_t: (H, D_out)  linear2 weight, pre-transposed to [in, out]
    b2:   (D_out,)

    Parameters may be pre-padded (see pad_ff_params); in that case pass the
    real d_in / hidden / d_out explicitly.
    """
    B, x_d = x.shape
    d_in = x_d if d_in is None else d_in
    hidden = w1_t.shape[1] if hidden is None else hidden
    d_out = w2_t.shape[1] if d_out is None else d_out

    # ---- lane/sublane aligned (padded) sizes --------------------------------
    Di_p = _round_up(max(x_d, w1_t.shape[0]), _LANE)
    H_p = _round_up(max(w1_t.shape[1], w2_t.shape[0], b1.shape[0]), _LANE)
    Do_p = _round_up(max(w2_t.shape[1], b2.shape[0]), _LANE)

    vmem_cap = _vmem_capacity_bytes()
    small_vmem = vmem_cap < (96 << 20)   # v7x-class: 64 MiB per TensorCore

    if tile_k is None:
        # Bigger K blocks on 128 MiB parts (v5e/v6e); conservative on v7x.
        tile_k = _pick_tile(Di_p, 512 if small_vmem else 1024, _LANE)
    else:
        tile_k = _round_up(tile_k, _LANE)
    Di_p = _round_up(Di_p, tile_k)
    nk = Di_p // tile_k

    if tile_b is None:
        tile_b = min(256 if small_vmem else 512, _round_up(B, _SUBLANE))
        if small_vmem and B >= 2 * _SUBLANE:
            # Keep nb >= 2 so the "parallel" batch axis shards across both
            # TensorCores on 2-TC chips (v7x).
            tile_b = min(tile_b, _round_up(-(-B // 2), _SUBLANE))
    tile_b = _round_up(tile_b, _SUBLANE)
    B_p = _round_up(B, tile_b)
    nb = B_p // tile_b

    # ---- zero-pad operands (no-ops if pre-padded via pad_ff_params) ---------
    x_p = _pad_to(x, (B_p, Di_p))
    w1_p = _pad_to(w1_t, (Di_p, H_p))
    b1_p = _pad_to(b1.astype(jnp.float32), (H_p,)).reshape(1, H_p)
    w2_p = _pad_to(w2_t, (H_p, Do_p))
    b2_p = _pad_to(b2.astype(jnp.float32), (Do_p,)).reshape(1, Do_p)

    const = lambda i, k: (0, 0)

    def _invariant_spec(shape):
        # Grid-invariant input: a single VMEM buffer is enough (the second
        # pipeline buffer would be pure waste).
        try:
            return pl.BlockSpec(shape, const, pipeline_mode=pl.Buffered(1))
        except TypeError:
            return pl.BlockSpec(shape, const)

    # x / w1 keep the default double-buffered pipeline.  (On v5e, if DMA is
    # still exposed in xprof, sweep these to pl.Buffered(3).)
    in_specs = [
        pl.BlockSpec((tile_b, tile_k), lambda i, k: (i, k)),   # x   (B,K tiled)
        pl.BlockSpec((tile_k, H_p), lambda i, k: (k, 0)),      # w1^T (K tiled)
        _invariant_spec((1, H_p)),                             # b1
    ]
    operands = [x_p, w1_p, b1_p]

    if norm:
        if gamma is None:
            gamma = jnp.ones((hidden,), jnp.float32)
        if beta is None:
            beta = jnp.zeros((hidden,), jnp.float32)
        g_p = _pad_to(gamma.astype(jnp.float32), (H_p,)).reshape(1, H_p)
        be_p = _pad_to(beta.astype(jnp.float32), (H_p,)).reshape(1, H_p)
        in_specs += [_invariant_spec((1, H_p)),                # gamma
                     _invariant_spec((1, H_p))]                # beta
        operands += [g_p, be_p]

    in_specs += [
        _invariant_spec((H_p, Do_p)),                          # w2^T (resident)
        _invariant_spec((1, Do_p)),                            # b2
    ]
    operands += [w2_p, b2_p]

    # ---- VMEM budget / cost hints -------------------------------------------
    def _nbytes(shape, dt):
        return math.prod(shape) * jnp.dtype(dt).itemsize

    vmem_est = (
        2 * _nbytes((tile_b, tile_k), x.dtype)        # x tile, double-buffered
        + 2 * _nbytes((tile_k, H_p), w1_t.dtype)      # w1 K-tile, double-buffered
        + 1 * _nbytes((H_p, Do_p), w2_t.dtype)        # w2, single-buffered
        + 2 * _nbytes((tile_b, Do_p), x.dtype)        # out tile
        + 3 * _nbytes((tile_b, H_p), jnp.float32)     # acc + epilogue temporaries
        + 6 * _nbytes((1, H_p), jnp.float32)          # bias / gamma / beta rows
    )
    # Generation-aware cap: never ask for more than ~85% of physical VMEM.
    vmem_limit = int(min(0.85 * vmem_cap, max(32 * 1024 * 1024, 2 * vmem_est)))
    vmem_limit = int(max(vmem_limit, min(0.90 * vmem_cap, vmem_est + (4 << 20))))

    out_itemsize = jnp.dtype(x.dtype).itemsize
    cost = pl.CostEstimate(
        flops=2 * B * d_in * hidden + 2 * B * hidden * d_out,
        transcendentals=B if norm else 0,
        bytes_accessed=int(
            x_p.size * jnp.dtype(x_p.dtype).itemsize
            + nb * w1_p.size * jnp.dtype(w1_p.dtype).itemsize   # w1 re-streamed per batch tile
            + w2_p.size * jnp.dtype(w2_p.dtype).itemsize
            + 4 * (H_p * (3 if norm else 1) + Do_p)
            + B_p * Do_p * out_itemsize),
    )

    out = pl.pallas_call(
        functools.partial(_ff_kernel, norm, hidden),
        out_shape=jax.ShapeDtypeStruct((B_p, Do_p), x.dtype),
        grid_spec=pltpu.PrefetchScalarGridSpec(
            num_scalar_prefetch=0,
            grid=(nb, nk),
            in_specs=in_specs,
            out_specs=pl.BlockSpec((tile_b, Do_p), lambda i, k: (i, 0)),
            scratch_shapes=[pltpu.VMEM((tile_b, H_p), jnp.float32)],
        ),
        compiler_params=pltpu.CompilerParams(
            dimension_semantics=("parallel", "arbitrary"),
            vmem_limit_bytes=vmem_limit,
        ),
        cost_estimate=cost,
    )(*operands)

    return out[:B, :d_out]


# ----------------------------------------------------------------------------
# Reference / init helpers (host-side, deterministic, in-script only)
# ----------------------------------------------------------------------------
def _orthogonal(key, rows, cols, dtype=jnp.float32):
    """Deterministic orthogonal init (torch.nn.init.orthogonal_ semantics)."""
    flat = jax.random.normal(key, (max(rows, cols), min(rows, cols)), jnp.float32)
    q, r = jnp.linalg.qr(flat)
    q = q * jnp.sign(jnp.diagonal(r))[None, :]
    if rows < cols:
        q = q.T
    return q[:rows, :cols].astype(dtype)


def _reference(x, w1_t, b1, w2_t, b2, gamma, beta, norm):
    h = x.astype(jnp.float32) @ w1_t.astype(jnp.float32) + b1
    if norm:
        mean = jnp.mean(h, axis=-1, keepdims=True)
        var = jnp.mean((h - mean) ** 2, axis=-1, keepdims=True)
        h = (h - mean) / jnp.sqrt(var + LN_EPS) * gamma + beta
    h = jnp.maximum(h, 0.0)
    return h @ w2_t.astype(jnp.float32) + b2


if __name__ == "__main__":
    key = jax.random.PRNGKey(0)
    k_x, k_w1, k_b1, k_w2, k_b2 = jax.random.split(key, 5)

    B, D_in, H, D_out = 8, 32, 64, 16
    norm = True

    x = jax.random.normal(k_x, (B, D_in), jnp.float32)

    # "Module init": orthogonal weights in PyTorch layout [out, in], uniform
    # biases (PyTorch Linear default: U(-1/sqrt(fan_in), 1/sqrt(fan_in))).
    w1 = _orthogonal(k_w1, H, D_in)            # linear1.weight  (H, D_in)
    w2 = _orthogonal(k_w2, D_out, H)           # linear2.weight  (D_out, H)
    b1 = jax.random.uniform(k_b1, (H,), jnp.float32,
                            -1.0 / math.sqrt(D_in), 1.0 / math.sqrt(D_in))
    b2 = jax.random.uniform(k_b2, (D_out,), jnp.float32,
                            -1.0 / math.sqrt(H), 1.0 / math.sqrt(H))
    gamma = jnp.ones((H,), jnp.float32)
    beta = jnp.zeros((H,), jnp.float32)

    # Pre-transpose ONCE at init so the hot path never pays the transpose.
    w1_t = jnp.transpose(w1)                   # (D_in, H)
    w2_t = jnp.transpose(w2)                   # (H, D_out)

    ref = _reference(x, w1_t, b1, w2_t, b2, gamma, beta, norm)

    # Path 1: raw (unpadded) f32 weights; the wrapper pads inside the call.
    ff = jax.jit(functools.partial(feedforward, norm=norm))
    out = jax.block_until_ready(ff(x, w1_t, b1, w2_t, b2, gamma, beta))
    assert out.shape == (B, D_out)
    assert jnp.allclose(out, ref, atol=1e-4, rtol=1e-4), "f32 mismatch vs reference"

    # Path 2: padding hoisted out of the hot path (done once, outside jit) +
    # bf16 weights/activations on the MXU with f32 accumulation in-kernel.
    (w1_pp, b1_pp, w2_pp, b2_pp, g_pp, be_pp), (di, hi, do) = pad_ff_params(
        w1_t.astype(jnp.bfloat16), b1, w2_t.astype(jnp.bfloat16), b2,
        gamma, beta, norm=norm)
    ff_pre = jax.jit(functools.partial(feedforward, norm=norm,
                                       d_in=di, hidden=hi, d_out=do))
    out_bf16 = jax.block_until_ready(
        ff_pre(x.astype(jnp.bfloat16), w1_pp, b1_pp, w2_pp, b2_pp, g_pp, be_pp))
    assert out_bf16.shape == (B, D_out)
    assert jnp.allclose(out_bf16.astype(jnp.float32), ref, atol=1e-1, rtol=1e-1), \
        "bf16 mismatch vs reference"

    print("KERNEL_OK")
</pallas_src>

<mosaic_0001>
module attributes {stable_mosaic.version = 11 : i64} {
  func.func @_ff_kernel(%arg0: i32, %arg1: i32, %arg2: memref<16x128xf32, #tpu.memory_space<vmem>>, %arg3: memref<128x128xf32, #tpu.memory_space<vmem>>, %arg4: memref<1x128xf32, #tpu.memory_space<vmem>>, %arg5: memref<1x128xf32, #tpu.memory_space<vmem>>, %arg6: memref<1x128xf32, #tpu.memory_space<vmem>>, %arg7: memref<128x128xf32, #tpu.memory_space<vmem>>, %arg8: memref<1x128xf32, #tpu.memory_space<vmem>>, %arg9: memref<16x128xf32, #tpu.memory_space<vmem>>, %arg10: memref<16x128xf32, #tpu.memory_space<vmem>>) attributes {dimension_semantics = [#tpu.dimension_semantics<parallel>, #tpu.dimension_semantics<arbitrary>], iteration_bounds = array<i64: 1, 1>, scalar_prefetch = 0 : i64, scratch_operands = 1 : i64, tpu.core_type = #tpu.core_type<tc>, window_params = [{transform_indices = @transform_0, window_bounds = array<i64: 16, 128>}, {transform_indices = @transform_1, window_bounds = array<i64: 128, 128>}, {pipeline_mode = #tpu.pipeline_mode<synchronous>, transform_indices = @transform_2, window_bounds = array<i64: 1, 128>}, {pipeline_mode = #tpu.pipeline_mode<synchronous>, transform_indices = @transform_3, window_bounds = array<i64: 1, 128>}, {pipeline_mode = #tpu.pipeline_mode<synchronous>, transform_indices = @transform_4, window_bounds = array<i64: 1, 128>}, {pipeline_mode = #tpu.pipeline_mode<synchronous>, transform_indices = @transform_5, window_bounds = array<i64: 128, 128>}, {pipeline_mode = #tpu.pipeline_mode<synchronous>, transform_indices = @transform_6, window_bounds = array<i64: 1, 128>}, {transform_indices = @transform_7, window_bounds = array<i64: 16, 128>}]} {
    %c0 = arith.constant 0 : index
    %c0_0 = arith.constant 0 : index
    %0 = vector.load %arg2[%c0, %c0_0] : memref<16x128xf32, #tpu.memory_space<vmem>>, vector<16x128xf32>
    %c0_1 = arith.constant 0 : index
    %c0_2 = arith.constant 0 : index
    %1 = vector.load %arg3[%c0_1, %c0_2] : memref<128x128xf32, #tpu.memory_space<vmem>>, vector<128x128xf32>
    %cst = arith.constant dense<0.000000e+00> : vector<16x128xf32>
    %2 = tpu.matmul %0, %1, %cst {dimension_numbers = #tpu.dot_dimension_numbers<[1], [0], [0], [1], [0, 0, 1, 1], [], []>} : vector<16x128xf32>, vector<128x128xf32>, vector<16x128xf32> -> vector<16x128xf32>
    %c0_i32 = arith.constant 0 : i32
    %3 = arith.cmpi eq, %arg1, %c0_i32 : i32
    %4 = arith.extui %3 : i1 to i32
    %c0_i32_3 = arith.constant 0 : i32
    %5 = arith.cmpi ne, %4, %c0_i32_3 : i32
    scf.if %5 {
      %c0_8 = arith.constant 0 : index
      %c0_9 = arith.constant 0 : index
      %12 = vector.load %arg10[%c0_8, %c0_9] : memref<16x128xf32, #tpu.memory_space<vmem>>, vector<16x128xf32>
      tpu.vector_store %arg10[%c0_8, %c0_9], %2 {strides = array<i32>} : memref<16x128xf32, #tpu.memory_space<vmem>>, vector<16x128xf32>,
    } else {
    }
    %c0_i32_4 = arith.constant 0 : i32
    %6 = arith.cmpi ne, %arg1, %c0_i32_4 : i32
    %7 = arith.extui %6 : i1 to i32
    %c0_i32_5 = arith.constant 0 : i32
    %8 = arith.cmpi ne, %7, %c0_i32_5 : i32
    scf.if %8 {
      %c0_8 = arith.constant 0 : index
      %c0_9 = arith.constant 0 : index
      %12 = vector.load %arg10[%c0_8, %c0_9] : memref<16x128xf32, #tpu.memory_space<vmem>>, vector<16x128xf32>
      %13 = arith.addf %12, %2 : vector<16x128xf32>
      %c0_10 = arith.constant 0 : index
      %c0_11 = arith.constant 0 : index
      %14 = vector.load %arg10[%c0_10, %c0_11] : memref<16x128xf32, #tpu.memory_space<vmem>>, vector<16x128xf32>
      tpu.vector_store %arg10[%c0_10, %c0_11], %13 {strides = array<i32>} : memref<16x128xf32, #tpu.memory_space<vmem>>, vector<16x128xf32>,
    } else {
    }
    %c0_i32_6 = arith.constant 0 : i32
    %9 = arith.cmpi eq, %arg1, %c0_i32_6 : i32
    %10 = arith.extui %9 : i1 to i32
    %c0_i32_7 = arith.constant 0 : i32
    %11 = arith.cmpi ne, %10, %c0_i32_7 : i32
    scf.if %11 {
      %c0_8 = arith.constant 0 : index
      %c0_9 = arith.constant 0 : index
      %12 = vector.load %arg10[%c0_8, %c0_9] : memref<16x128xf32, #tpu.memory_space<vmem>>, vector<16x128xf32>
      %c0_10 = arith.constant 0 : index
      %c0_11 = arith.constant 0 : index
      %13 = vector.load %arg4[%c0_10, %c0_11] : memref<1x128xf32, #tpu.memory_space<vmem>>, vector<1x128xf32>
      %14 = vector.broadcast %13 : vector<1x128xf32> to vector<16x128xf32>
      %15 = arith.addf %12, %14 : vector<16x128xf32>
      %cst_12 = arith.constant dense<0.000000e+00> : vector<16xf32>
      %16 = vector.multi_reduction <add>, %15, %cst_12 [1] : vector<16x128xf32> to vector<16xf32>
      %17 = vector.shape_cast %16 : vector<16xf32> to vector<16x1xf32>
      %cst_13 = arith.constant 1.562500e-02 : f32
      %18 = vector.broadcast %cst_13 : f32 to vector<16x1xf32>
      %19 = arith.mulf %17, %18 : vector<16x1xf32>
      %20 = vector.broadcast %19 : vector<16x1xf32> to vector<16x128xf32>
      %21 = arith.subf %15, %20 : vector<16x128xf32>
      %22 = tpu.iota {dimensions = array<i32: 1>} : vector<16x128xi32>
      %c64_i32 = arith.constant 64 : i32
      %23 = vector.broadcast %c64_i32 : i32 to vector<16x128xi32>
      %24 = arith.cmpi slt, %22, %23 : vector<16x128xi32>
      %cst_14 = arith.constant 0.000000e+00 : f32
      %25 = vector.broadcast %cst_14 : f32 to vector<16x128xf32>
      %26 = arith.select %24, %21, %25 : vector<16x128xi1>, vector<16x128xf32>
      %27 = arith.mulf %26, %26 : vector<16x128xf32>
      %cst_15 = arith.constant dense<0.000000e+00> : vector<16xf32>
      %28 = vector.multi_reduction <add>, %27, %cst_15 [1] : vector<16x128xf32> to vector<16xf32>
      %29 = vector.shape_cast %28 : vector<16xf32> to vector<16x1xf32>
      %cst_16 = arith.constant 1.562500e-02 : f32
      %30 = vector.broadcast %cst_16 : f32 to vector<16x1xf32>
      %31 = arith.mulf %29, %30 : vector<16x1xf32>
      %cst_17 = arith.constant 9.99999974E-6 : f32
      %32 = vector.broadcast %cst_17 : f32 to vector<16x1xf32>
      %33 = arith.addf %31, %32 : vector<16x1xf32>
      %34 = math.rsqrt %33 : vector<16x1xf32>
      %35 = vector.broadcast %34 : vector<16x1xf32> to vector<16x128xf32>
      %36 = arith.mulf %26, %35 : vector<16x128xf32>
      %c0_18 = arith.constant 0 : index
      %c0_19 = arith.constant 0 : index
      %37 = vector.load %arg5[%c0_18, %c0_19] : memref<1x128xf32, #tpu.memory_space<vmem>>, vector<1x128xf32>
      %38 = vector.broadcast %37 : vector<1x128xf32> to vector<16x128xf32>
      %39 = arith.mulf %36, %38 : vector<16x128xf32>
      %c0_20 = arith.constant 0 : index
      %c0_21 = arith.constant 0 : index
      %40 = vector.load %arg6[%c0_20, %c0_21] : memref<1x128xf32, #tpu.memory_space<vmem>>, vector<1x128xf32>
      %41 = vector.broadcast %40 : vector<1x128xf32> to vector<16x128xf32>
      %42 = arith.addf %39, %41 : vector<16x128xf32>
      %cst_22 = arith.constant 0.000000e+00 : f32
      %43 = vector.broadcast %cst_22 : f32 to vector<16x128xf32>
      %44 = arith.maximumf %42, %43 : vector<16x128xf32>
      %c0_23 = arith.constant 0 : index
      %c0_24 = arith.constant 0 : index
      %45 = vector.load %arg10[%c0_23, %c0_24] : memref<16x128xf32, #tpu.memory_space<vmem>>, vector<16x128xf32>
      tpu.vector_store %arg10[%c0_23, %c0_24], %44 {strides = array<i32>} : memref<16x128xf32, #tpu.memory_space<vmem>>, vector<16x128xf32>,
      %c0_25 = arith.constant 0 : index
      %c0_26 = arith.constant 0 : index
      %46 = vector.load %arg10[%c0_25, %c0_26] : memref<16x128xf32, #tpu.memory_space<vmem>>, vector<16x128xf32>
      %c0_27 = arith.constant 0 : index
      %c0_28 = arith.constant 0 : index
      %47 = vector.load %arg7[%c0_27, %c0_28] : memref<128x128xf32, #tpu.memory_space<vmem>>, vector<128x128xf32>
      %cst_29 = arith.constant dense<0.000000e+00> : vector<16x128xf32>
      %48 = tpu.matmul %46, %47, %cst_29 {dimension_numbers = #tpu.dot_dimension_numbers<[1], [0], [0], [1], [0, 0, 1, 1], [], []>} : vector<16x128xf32>, vector<128x128xf32>, vector<16x128xf32> -> vector<16x128xf32>
      %c0_30 = arith.constant 0 : index
      %c0_31 = arith.constant 0 : index
      %49 = vector.load %arg8[%c0_30, %c0_31] : memref<1x128xf32, #tpu.memory_space<vmem>>, vector<1x128xf32>
      %50 = vector.broadcast %49 : vector<1x128xf32> to vector<16x128xf32>
      %51 = arith.addf %48, %50 : vector<16x128xf32>
      %c0_32 = arith.constant 0 : index
      %c0_33 = arith.constant 0 : index
      %52 = vector.load %arg9[%c0_32, %c0_33] : memref<16x128xf32, #tpu.memory_space<vmem>>, vector<16x128xf32>
      tpu.vector_store %arg9[%c0_32, %c0_33], %51 {strides = array<i32>} : memref<16x128xf32, #tpu.memory_space<vmem>>, vector<16x128xf32>,
    } else {
    }
    return
  }
  func.func @transform_0(%arg0: i32, %arg1: i32) -> (i32, i32) {
    %c0_i32 = arith.constant 0 : i32
    return %arg0, %arg1 : i32, i32
  }
  func.func @transform_1(%arg0: i32, %arg1: i32) -> (i32, i32) {
    %c0_i32 = arith.constant 0 : i32
    %c0_i32_0 = arith.constant 0 : i32
    return %arg1, %c0_i32 : i32, i32
  }
  func.func @transform_2(%arg0: i32, %arg1: i32) -> (i32, i32) {
    %c0_i32 = arith.constant 0 : i32
    %c0_i32_0 = arith.constant 0 : i32
    %c0_i32_1 = arith.constant 0 : i32
    return %c0_i32, %c0_i32_0 : i32, i32
  }
  func.func @transform_3(%arg0: i32, %arg1: i32) -> (i32, i32) {
    %c0_i32 = arith.constant 0 : i32
    %c0_i32_0 = arith.constant 0 : i32
    %c0_i32_1 = arith.constant 0 : i32
    return %c0_i32, %c0_i32_0 : i32, i32
  }
  func.func @transform_4(%arg0: i32, %arg1: i32) -> (i32, i32) {
    %c0_i32 = arith.constant 0 : i32
    %c0_i32_0 = arith.constant 0 : i32
    %c0_i32_1 = arith.constant 0 : i32
    return %c0_i32, %c0_i32_0 : i32, i32
  }
  func.func @transform_5(%arg0: i32, %arg1: i32) -> (i32, i32) {
    %c0_i32 = arith.constant 0 : i32
    %c0_i32_0 = arith.constant 0 : i32
    %c0_i32_1 = arith.constant 0 : i32
    return %c0_i32, %c0_i32_0 : i32, i32
  }
  func.func @transform_6(%arg0: i32, %arg1: i32) -> (i32, i32) {
    %c0_i32 = arith.constant 0 : i32
    %c0_i32_0 = arith.constant 0 : i32
    %c0_i32_1 = arith.constant 0 : i32
    return %c0_i32, %c0_i32_0 : i32, i32
  }
  func.func @transform_7(%arg0: i32, %arg1: i32) -> (i32, i32) {
    %c0_i32 = arith.constant 0 : i32
    %c0_i32_0 = arith.constant 0 : i32
    return %arg0, %c0_i32 : i32, i32
  }
}

</mosaic_0001>

<bundles_post_ra>
// kernel: feedforward.1
= control target key start
LH: loop header
LB: loop body
LE: loop exit
PB: predicated region body
PF: predicated region fallthrough
CT: control target
= control target key end

     0   :  { %v157_v37 = vlaneseq  ;;  %s642_s1 = inlined_call_operand.vmem [shape: f32[128,128], index: 1, kind: input, shape index: {}]   ;;  %s643_s0 = inlined_call_operand.vmem [shape: f32[16,128], index: 0, kind: input, shape index: {}]   ;;  %s644_s2 = inlined_call_operand.vmem [shape: f32[1,128], index: 2, kind: input, shape index: {}]   ;;  %s645_s5 = inlined_call_operand.vmem [shape: f32[128,128], index: 5, kind: input, shape index: {}]   ;;  %s646_s3 = inlined_call_operand.vmem [shape: f32[1,128], index: 3, kind: input, shape index: {}]   ;;  %s647_s4 = inlined_call_operand.vmem [shape: f32[1,128], index: 4, kind: input, shape index: {}]   ;;  %s648_s6 = inlined_call_operand.vmem [shape: f32[1,128], index: 6, kind: input, shape index: {}]   ;;  %s649_s7 = inlined_call_operand.vmem [shape: f32[16,128], index: 7, kind: output, shape index: {}]  }
   0x1   :  { %v28_v0 = vld [vmem:[%s642_s1] sm:$0xff]  ;;  %v29_v1 = vld [vmem:[%s642_s1 + $0x8] sm:$0xff]  ;;  %v30_v2 = vld [vmem:[%s642_s1 + $0x10] sm:$0xff] }
   0x2   :  { %v414_v3 = vpack.c.bf16 %v29_v1, %v28_v0  ;;  %v31_v4 = vld [vmem:[%s642_s1 + $0x18] sm:$0xff]  ;;  %v32_v6 = vld [vmem:[%s642_s1 + $0x20] sm:$0xff]  ;;  %v33_v7 = vld [vmem:[%s642_s1 + $0x28] sm:$0xff]  ;;  %v158_v38 = vand.u32 127, %v157_v37 }
   0x3   :  { %v418_v5 = vpack.c.bf16 %v31_v4, %v30_v2  ;;  %v422_v8 = vpack.c.bf16 %v33_v7, %v32_v6  ;;  %v26_v9 = vld [vmem:[%s643_s0] sm:$0xff]  ;;  %v34_v10 = vld [vmem:[%s642_s1 + $0x30] sm:$0xff]  ;;  %v35_v11 = vld [vmem:[%s642_s1 + $0x38] sm:$0xff] }
   0x4   :  { %415 = vmatprep.subr.bf16.mxu0 %v414_v3  ;;  %376 = vmatprep.mubr.f32.mxu0 %v26_v9  ;;  %v426_v12 = vpack.c.bf16 %v35_v11, %v34_v10  ;;  %v36_v13 = vld [vmem:[%s642_s1 + $0x40] sm:$0xff]  ;;  %v37_v14 = vld [vmem:[%s642_s1 + $0x48] sm:$0xff]  ;;  %v38_v16 = vld [vmem:[%s642_s1 + $0x50] sm:$0xff]  ;;  %vm159_vm0 = vcmp.lt.s32.totalorder %v158_v38, 64 }
   0x5   :  { %417 = vmatpush3.bf16.msra.mxu0 %v414_v3  ;;  %v430_v15 = vpack.c.bf16 %v37_v14, %v36_v13  ;;  %v39_v17 = vld [vmem:[%s642_s1 + $0x58] sm:$0xff]  ;;  %v40_v19 = vld [vmem:[%s642_s1 + $0x60] sm:$0xff]  ;;  %v41_v20 = vld [vmem:[%s642_s1 + $0x68] sm:$0xff] }
   0x6   :  { %419 = vmatprep.subr.bf16.mxu0 %v418_v5  ;;  %v434_v18 = vpack.c.bf16 %v39_v17, %v38_v16  ;;  %v438_v21 = vpack.c.bf16 %v41_v20, %v40_v19  ;;  %v42_v22 = vld [vmem:[%s642_s1 + $0x70] sm:$0xff]  ;;  %v43_v23 = vld [vmem:[%s642_s1 + $0x78] sm:$0xff]  ;;  %v27_v25 = vld [vmem:[%s643_s0 + $0x8] sm:$0xff] }
   0x7   :  { %v442_v24 = vpack.c.bf16 %v43_v23, %v42_v22  ;;  %v304_v26 = vld [vmem:[%s644_s2] ss:$0 sm:$0xff]  ;;  %v201_v32 = vld [vmem:[%s645_s5 + $0x8] sm:$0xff]  ;;  %v202_v33 = vld [vmem:[%s645_s5 + $0x10] sm:$0xff] }
   0x8   :  { %v200_v31 = vld [vmem:[%s645_s5] sm:$0xff]  ;;  %v203_v35 = vld [vmem:[%s645_s5 + $0x18] sm:$0xff]  ;;  %v205_v50 = vld [vmem:[%s645_s5 + $0x28] sm:$0xff] }
   0x9   :  { %421 = vmatpush3.bf16.msra.mxu0 %v418_v5  ;;  %v446_v34 = vpack.c.bf16 %v201_v32, %v200_v31  ;;  %v450_v36 = vpack.c.bf16 %v203_v35, %v202_v33  ;;  %v204_v49 = vld [vmem:[%s645_s5 + $0x20] sm:$0xff]  ;;  %v206_v52 = vld [vmem:[%s645_s5 + $0x30] sm:$0xff]  ;;  %v207_v53 = vld [vmem:[%s645_s5 + $0x38] sm:$0xff] }
   0xa   :  { %423 = vmatprep.subr.bf16.mxu0 %v422_v8  ;;  %v454_v51 = vpack.c.bf16 %v205_v50, %v204_v49  ;;  %v458_v54 = vpack.c.bf16 %v207_v53, %v206_v52  ;;  %v208_v55 = vld [vmem:[%s645_s5 + $0x40] sm:$0xff]  ;;  %v209_v56 = vld [vmem:[%s645_s5 + $0x48] sm:$0xff]  ;;  %v210_v57 = vld [vmem:[%s645_s5 + $0x50] sm:$0xff] }
   0xb   :  { %447 = vmatprep.subr.bf16.mxu1 %v446_v34  ;;  %v462_v58 = vpack.c.bf16 %v209_v56, %v208_v55  ;;  %v211_v59 = vld [vmem:[%s645_s5 + $0x58] sm:$0xff]  ;;  %v212_v61 = vld [vmem:[%s645_s5 + $0x60] sm:$0xff]  ;;  %v213_v62 = vld [vmem:[%s645_s5 + $0x68] sm:$0xff] }
   0xc   :  { %449 = vmatpush3.bf16.msra.mxu1 %v446_v34  ;;  %v466_v60 = vpack.c.bf16 %v211_v59, %v210_v57  ;;  %v470_v63 = vpack.c.bf16 %v213_v62, %v212_v61  ;;  %v214_v0 = vld [vmem:[%s645_s5 + $0x70] sm:$0xff]  ;;  %v215_v1 = vld [vmem:[%s645_s5 + $0x78] sm:$0xff]  ;;  %v305_v10 = vld [vmem:[%s646_s3] ss:$0 sm:$0xff] }
   0xd   :  { %425 = vmatpush3.bf16.msra.mxu0 %v422_v8  ;;  %451 = vmatprep.subr.bf16.mxu1 %v450_v36  ;;  %v474_v2 = vpack.c.bf16 %v215_v1, %v214_v0 }
   0xe   :  { %427 = vmatprep.subr.bf16.mxu0 %v426_v12 }
  0x10   :  { %453 = vmatpush3.bf16.msra.mxu1 %v450_v36 }
  0x11   :  { %429 = vmatpush3.bf16.msra.mxu0 %v426_v12  ;;  %455 = vmatprep.subr.bf16.mxu1 %v454_v51  ;;  %v306_v12 = vld [vmem:[%s647_s4] ss:$0 sm:$0xff] }
  0x12   :  { %431 = vmatprep.subr.bf16.mxu0 %v430_v15 }
  0x14   :  { %457 = vmatpush3.bf16.msra.mxu1 %v454_v51 }
  0x15   :  { %433 = vmatpush3.bf16.msra.mxu0 %v430_v15  ;;  %459 = vmatprep.subr.bf16.mxu1 %v458_v54 }
  0x16   :  { %435 = vmatprep.subr.bf16.mxu0 %v434_v18 }
  0x18   :  { %461 = vmatpush3.bf16.msra.mxu1 %v458_v54 }
  0x19   :  { %437 = vmatpush3.bf16.msra.mxu0 %v434_v18  ;;  %463 = vmatprep.subr.bf16.mxu1 %v462_v58 }
  0x1a   :  { %439 = vmatprep.subr.bf16.mxu0 %v438_v21 }
  0x1c   :  { %465 = vmatpush3.bf16.msra.mxu1 %v462_v58 }
  0x1d   :  { %441 = vmatpush3.bf16.msra.mxu0 %v438_v21  ;;  %467 = vmatprep.subr.bf16.mxu1 %v466_v60  ;;  %v307_v21 = vld [vmem:[%s648_s6] ss:$0 sm:$0xff] }
  0x1e   :  { %443 = vmatprep.subr.bf16.mxu0 %v442_v24 }
  0x20   :  { %469 = vmatpush3.bf16.msra.mxu1 %v466_v60 }
  0x21   :  { %445 = vmatpush3.bf16.msra.mxu0 %v442_v24  ;;  %471 = vmatprep.subr.bf16.mxu1 %v470_v63 }
  0x24   :  { %377 = vmatmul.mubr.f32.vlgmr.msra.gmra.mrb[0].mxu0 %v27_v25  ;;  %473 = vmatpush3.bf16.msra.mxu1 %v470_v63 }
  0x25   :  { %475 = vmatprep.subr.bf16.mxu1 %v474_v2 }
  0x28   :  { %477 = vmatpush3.bf16.msra.mxu1 %v474_v2 }
  0xf7   :  { %v378_v27 = vpop.f32.mrb[0].mxu0 }
  0xf8   :  { %v110_v28 = vpop.f32.mrb[1].mxu0  ;;  %v148_v30 = vadd.f32 %v378_v27, %v304_v26 }
  0xf9   :  { %v147_v29 = vadd.f32 %v304_v26, %v110_v28 }
  0xfb   :  { %149 = vadd.xlane.f32.xlu0 %v147_v29 }
  0xff   :  { %151 = vadd.xlane.f32.xlu0 %v148_v30 }
 0x188   :  { %v150_v39 = vpop.xlane.xlu0 %149 }
 0x189   :  { %v153_v40 = vmul.f32 0.015625, %v150_v39 }
 0x18b   :  { %v155_v41 = vsub.f32 %v147_v29, %v153_v40 }
 0x18c   :  { %v152_v42 = vpop.xlane.xlu0 %151 }
 0x18d   :  { %v154_v43 = vmul.f32 0.015625, %v152_v42  ;;  %v160_v44 = vsel %vm159_vm0, %v155_v41, 0.0 }
 0x18e   :  { %v162_v45 = vmul.f32 %v160_v44, %v160_v44 }
 0x18f   :  { %v156_v46 = vsub.f32 %v148_v30, %v154_v43 }
 0x190   :  { %164 = vadd.xlane.f32.xlu1 %v162_v45 }
 0x191   :  { %v161_v47 = vsel %vm159_vm0, %v156_v46, 0.0 }
 0x192   :  { %v163_v48 = vmul.f32 %v161_v47, %v161_v47 }
 0x194   :  { %166 = vadd.xlane.f32.xlu1 %v163_v48 }
 0x21d   :  { %v165_v3 = vpop.xlane.xlu1 %164 }
 0x21e   :  { %v168_v4 = vmul.f32 0.015625, %v165_v3 }
 0x220   :  { %v170_v5 = vadd.f32 1e-05, %v168_v4 }
 0x221   :  { %v167_v6 = vpop.xlane.xlu1 %166 }
 0x222   :  { %478 = vrsqrt.f32 %v170_v5  ;;  %v169_v7 = vmul.f32 0.015625, %v167_v6 }
 0x224   :  { %v171_v8 = vadd.f32 1e-05, %v169_v7 }
 0x226   :  { %480 = vrsqrt.f32 %v171_v8 }
 0x22c   :  { %v479_v9 = vpop.eup %478 }
 0x22d   :  { %v174_v11 = vmul.f32 %v479_v9, %v160_v44 }
 0x22f   :  { %v183_v13 = vmul.f32 %v305_v10, %v174_v11 }
 0x230   :  { %v481_v14 = vpop.eup %480 }
 0x231   :  { %v175_v15 = vmul.f32 %v481_v14, %v161_v47  ;;  %v192_v16 = vadd.f32 %v306_v12, %v183_v13 }
 0x233   :  { %v184_v17 = vmul.f32 %v305_v10, %v175_v15  ;;  %v194_v18 = vmax.f32 %v192_v16, 0.0 }
 0x235   :  { %v193_v19 = vadd.f32 %v306_v12, %v184_v17  ;;  %411 = vmatprep.mubr.f32.mxu1 %v194_v18 }
 0x237   :  { %v195_v20 = vmax.f32 %v193_v19, 0.0 }
 0x239   :  { %412 = vmatmul.mubr.f32.vlgmr.msra.gmra.mrb[0].mxu1 %v195_v20 }
 0x30c   :  { %v413_v22 = vpop.f32.mrb[0].mxu1 }
 0x30d   :  { %v295_v23 = vadd.f32 %v413_v22, %v307_v21  ;;  %v289_v24 = vpop.f32.mrb[1].mxu1 }
 0x30e   :  { %v290_v25 = vadd.f32 %v307_v21, %v289_v24 }
 0x30f   :  { %299 = vst [vmem:[%s649_s7 + $0x8] sm:$0xff] %v295_v23 }
 0x310   :  { %298 = vst [vmem:[%s649_s7] sm:$0xff] %v290_v25 }

</bundles_post_ra>
